<compile_context>
chip_gen: v7x
topology: tpu7x:2x2x1
jax: 0.10.0
libtpu: 0.0.40
codegen_flags: <defaults>
</compile_context>

<pallas_src>
import functools
import math

import jax
import jax.numpy as jnp
import numpy as np
from jax.experimental import pallas as pl
from jax.experimental.pallas import tpu as pltpu

EPS = 1e-6
MAX_NORM = 1000.0   # manifold.normalize: torch.renorm(spatial, 2, 0, max_norm=1000)
R_CLAMP = 50.0      # manifold.exp_map_x: torch.clamp(tangent_norm, max=50)


# ---------------------------------------------------------------------------
# Shared hyperboloid math (pure jnp -> identical code runs inside the Pallas
# kernels and in the pure-JAX reference).
# ---------------------------------------------------------------------------
def _log_map_zero_spatial(x0, xs, sqrt_c):
    """Spatial part of log_o(x); tangent time component is 0 after normalize_tangent_zero."""
    z = jnp.maximum(x0 / sqrt_c, 1.0 + 1e-7)                 # arccosh domain clamp
    dist = sqrt_c * jnp.log(z + jnp.sqrt(z * z - 1.0))       # sqrt(c) * arccosh(x0 / sqrt(c))
    xs_norm = jnp.sqrt(jnp.sum(xs * xs, axis=1, keepdims=True) + EPS)
    return (dist / xs_norm) * xs


def _exp_map_zero(u, c):
    """exp_o of a tangent vector (0, u) followed by hyperboloid re-normalization."""
    sqrt_c = math.sqrt(c)
    r = jnp.sqrt(jnp.sum(u * u, axis=1, keepdims=True) + EPS)
    a = jnp.minimum(r, R_CLAMP) / sqrt_c
    sinh_a = 0.5 * (jnp.exp(a) - jnp.exp(-a))
    spatial = sqrt_c * sinh_a * (u / r)
    # torch.renorm(spatial, 2, 0, max_norm=1000): per-row L2 clamp before time recompute
    sn = jnp.sqrt(jnp.sum(spatial * spatial, axis=1, keepdims=True) + EPS)
    spatial = spatial * jnp.minimum(1.0, MAX_NORM / sn)
    time = jnp.sqrt(c + jnp.sum(spatial * spatial, axis=1, keepdims=True))
    return time, spatial


# ---------------------------------------------------------------------------
# Kernels
# ---------------------------------------------------------------------------
def _lorentz_linear_kernel(x_ref, wt_ref, b_ref, o_ref, *, c, use_bias):
    """One row-tile of LorentzLinear: log_o -> MXU matmul (+bias) -> exp_o, one fused store."""
    sqrt_c = math.sqrt(c)
    x = x_ref[...]                                            # (tn, 1+Din) single lane-dense load
    u = _log_map_zero_spatial(x[:, 0:1], x[:, 1:], sqrt_c)    # in-register time/spatial split
    mx = jnp.dot(u, wt_ref[...], preferred_element_type=jnp.float32)   # (tn, Dout-1)
    if use_bias:
        mx = mx + b_ref[...]
    time, spatial = _exp_map_zero(mx, c)
    o_ref[...] = jnp.concatenate([time, spatial], axis=1)     # one (tn, Dout) store


def _lorentz_agg_act_kernel(adj_ref, h_ref, o_ref, *, c_in, c_out, act):
    """One row-tile of LorentzAgg (dense spmm + Lorentz centroid) fused with LorentzAct."""
    sqrt_c_in = math.sqrt(c_in)
    # dense spmm on the MXU: (tn, Npad) @ (Npad, Dout)
    sum_x = jnp.dot(adj_ref[...], h_ref[...], preferred_element_type=jnp.float32)
    s0 = sum_x[:, 0:1]
    ss = sum_x[:, 1:]
    # Lorentz centroid: coeff = sqrt(c) / sqrt(|<s, s>_L|)
    l_inner = -s0 * s0 + jnp.sum(ss * ss, axis=1, keepdims=True)
    coeff = sqrt_c_in / jnp.sqrt(jnp.maximum(jnp.abs(l_inner), EPS))
    h0 = coeff * s0
    hs = coeff * ss
    # LorentzAct: log_o(c_in) -> act -> exp_o(c_out); tangent time stays 0 (act(0)=0 for ReLU)
    u = act(_log_map_zero_spatial(h0, hs, sqrt_c_in))
    time, spatial = _exp_map_zero(u, c_out)
    o_ref[...] = jnp.concatenate([time, spatial], axis=1)     # one (tn, Dout) store


# ---------------------------------------------------------------------------
# Wrapper
# ---------------------------------------------------------------------------
def _choose_tile_n(n, max_tile=512, min_grid=4):
    """Large row tiles (amortize ~0.35us/grid-step) but keep >= min_grid steps for megacore."""
    t = max(8, -(-n // min_grid))      # ceil(n / min_grid), at least 8
    t = -(-t // 8) * 8                 # round up to multiple of 8
    return int(min(max_tile, t))


def lorentz_gnn_forward(x, adj, weight, bias, c_in, c_out, use_bias=True,
                        act=jax.nn.relu, tile_n=512):
    """Eval-mode LorentzGraphNeuralNetwork forward (use_att=False). Returns h: (N, out_features)."""
    N, d_amb = x.shape
    d_out_m1, d_in = weight.shape
    d_out = d_out_m1 + 1
    assert d_amb == d_in + 1, "x must have in_features + 1 columns (time + spatial)"

    tn = _choose_tile_n(N, max_tile=tile_n)
    n_pad = pl.cdiv(N, tn) * tn
    grid = (n_pad // tn,)

    # Glue: pad rows to the tile (padded rows stay finite and are sliced away at the end);
    # padded adjacency rows/cols are zero so they never contribute to valid rows.
    xf = jnp.pad(x.astype(jnp.float32), ((0, n_pad - N), (0, 0)))
    adjf = jnp.pad(adj.astype(jnp.float32), ((0, n_pad - N), (0, n_pad - N)))
    wt = weight.T.astype(jnp.float32)                          # (Din, Dout-1)
    b = bias.reshape(1, d_out_m1).astype(jnp.float32)

    # ---- kernel 1: LorentzLinear --------------------------------------------------------
    lin_cost = pl.CostEstimate(
        flops=2 * n_pad * d_in * d_out_m1,
        transcendentals=6 * n_pad,
        bytes_accessed=4 * (n_pad * (d_in + 1) + n_pad * d_out + d_in * d_out_m1 + d_out_m1),
    )
    h = pl.pallas_call(
        functools.partial(_lorentz_linear_kernel, c=float(c_in), use_bias=bool(use_bias)),
        out_shape=jax.ShapeDtypeStruct((n_pad, d_out), jnp.float32),
        grid=grid,
        in_specs=[
            pl.BlockSpec((tn, d_in + 1), lambda i: (i, 0)),
            pl.BlockSpec((d_in, d_out_m1), lambda i: (0, 0)),
            pl.BlockSpec((1, d_out_m1), lambda i: (0, 0)),
        ],
        out_specs=pl.BlockSpec((tn, d_out), lambda i: (i, 0)),
        compiler_params=pltpu.CompilerParams(dimension_semantics=("parallel",)),
        cost_estimate=lin_cost,
    )(xf, wt, b)

    # ---- kernel 2: LorentzAgg (dense spmm + centroid) fused with LorentzAct --------------
    agg_cost = pl.CostEstimate(
        flops=2 * n_pad * n_pad * d_out,
        transcendentals=6 * n_pad,
        bytes_accessed=4 * (n_pad * n_pad + 2 * n_pad * d_out),
    )
    out = pl.pallas_call(
        functools.partial(_lorentz_agg_act_kernel, c_in=float(c_in), c_out=float(c_out), act=act),
        out_shape=jax.ShapeDtypeStruct((n_pad, d_out), jnp.float32),
        grid=grid,
        in_specs=[
            pl.BlockSpec((tn, n_pad), lambda i: (i, 0)),
            pl.BlockSpec((n_pad, d_out), lambda i: (0, 0)),
        ],
        out_specs=pl.BlockSpec((tn, d_out), lambda i: (i, 0)),
        compiler_params=pltpu.CompilerParams(dimension_semantics=("parallel",)),
        cost_estimate=agg_cost,
    )(adjf, h)

    return out[:N]


# ---------------------------------------------------------------------------
# Pure-JAX reference (same formulas / eps / clamps as the kernels)
# ---------------------------------------------------------------------------
def lorentz_gnn_ref(x, adj, weight, bias, c_in, c_out, use_bias=True, act=jax.nn.relu):
    sqrt_c_in = math.sqrt(c_in)
    # LorentzLinear
    u = _log_map_zero_spatial(x[:, 0:1], x[:, 1:], sqrt_c_in)
    mx = u @ weight.T
    if use_bias:
        mx = mx + bias[None, :]
    t, s = _exp_map_zero(mx, c_in)
    h = jnp.concatenate([t, s], axis=1)
    # LorentzAgg (dense spmm + Lorentz centroid)
    sum_x = adj @ h
    l_inner = -sum_x[:, 0:1] ** 2 + jnp.sum(sum_x[:, 1:] ** 2, axis=1, keepdims=True)
    coeff = sqrt_c_in / jnp.sqrt(jnp.maximum(jnp.abs(l_inner), EPS))
    hc = coeff * sum_x
    # LorentzAct
    u2 = act(_log_map_zero_spatial(hc[:, 0:1], hc[:, 1:], sqrt_c_in))
    t2, s2 = _exp_map_zero(u2, c_out)
    return jnp.concatenate([t2, s2], axis=1)


if __name__ == "__main__":
    # Small shapes consistent with the module: N nodes, in_features=32, out_features=16.
    N = 64
    in_features = 32
    out_features = 16
    c_in, c_out = 1.0, 2.0
    use_bias = True
    # drop_out only affects training (F.dropout on the weight); eval forward = identity.
    # act: the LGCN reference configuration uses ReLU.
    # TODO(synk): use_att=True (LorentzSparseSqDisAtt sparse attention) not implemented; dense spmm path only.
    # TODO(synk): self.ll (Euclidean Linear over 2*out_features) is constructed but never used in forward; omitted.

    key = jax.random.PRNGKey(0)
    k_x, k_w, k_a = jax.random.split(key, 3)

    # reset_parameters(): weight = xavier_uniform_(gain=sqrt(2)); bias = 0.
    fan_out, fan_in = out_features - 1, in_features
    bound = math.sqrt(2.0) * math.sqrt(6.0 / (fan_in + fan_out))
    weight = jax.random.uniform(k_w, (fan_out, fan_in), jnp.float32, -bound, bound)
    bias = jnp.zeros((fan_out,), jnp.float32)

    # x on the hyperboloid: random spatial part, time = sqrt(c_in + ||spatial||^2).
    x_spatial = 0.5 * jax.random.normal(k_x, (N, in_features), jnp.float32)
    x_time = jnp.sqrt(c_in + jnp.sum(x_spatial * x_spatial, axis=1, keepdims=True))
    x = jnp.concatenate([x_time, x_spatial], axis=1)           # (N, in_features + 1)

    # Dense symmetric row-normalized adjacency with self-loops (stand-in for torch.spmm's sparse adj).
    a = (jax.random.uniform(k_a, (N, N)) < 0.15).astype(jnp.float32)
    a = jnp.minimum(a + a.T + jnp.eye(N, dtype=jnp.float32), 1.0)
    adj = a / jnp.sum(a, axis=1, keepdims=True)

    out = lorentz_gnn_forward(x, adj, weight, bias, c_in, c_out, use_bias=use_bias)
    out = jax.block_until_ready(out)

    ref = lorentz_gnn_ref(x, adj, weight, bias, c_in, c_out, use_bias=use_bias)
    np.testing.assert_allclose(np.asarray(out), np.asarray(ref), rtol=1e-4, atol=1e-4)
    assert out.shape == (N, out_features)
    # Module forward returns (h, adj); h is the only computed tensor, adj passes through.
    print("KERNEL_OK")
</pallas_src>

<mosaic_0001>
module attributes {stable_mosaic.version = 11 : i64} {
  func.func @_lorentz_linear_kernel(%arg0: i32, %arg1: memref<16x33xf32, #tpu.memory_space<vmem>>, %arg2: memref<32x15xf32, #tpu.memory_space<vmem>>, %arg3: memref<1x15xf32, #tpu.memory_space<vmem>>, %arg4: memref<16x16xf32, #tpu.memory_space<vmem>>) attributes {dimension_semantics = [#tpu.dimension_semantics<parallel>], iteration_bounds = array<i64: 4>, scalar_prefetch = 0 : i64, scratch_operands = 0 : i64, tpu.core_type = #tpu.core_type<tc>, window_params = [{transform_indices = @transform_0, window_bounds = array<i64: 16, 33>}, {pipeline_mode = #tpu.pipeline_mode<synchronous>, transform_indices = @transform_1, window_bounds = array<i64: 32, 15>}, {pipeline_mode = #tpu.pipeline_mode<synchronous>, transform_indices = @transform_2, window_bounds = array<i64: 1, 15>}, {transform_indices = @transform_3, window_bounds = array<i64: 16, 16>}]} {
    %c0 = arith.constant 0 : index
    %c0_0 = arith.constant 0 : index
    %0 = vector.load %arg1[%c0, %c0_0] : memref<16x33xf32, #tpu.memory_space<vmem>>, vector<16x33xf32>
    %1 = vector.extract_strided_slice %0 {offsets = [0, 0], sizes = [16, 1], strides = [1, 1]} : vector<16x33xf32> to vector<16x1xf32>
    %2 = vector.extract_strided_slice %0 {offsets = [0, 1], sizes = [16, 32], strides = [1, 1]} : vector<16x33xf32> to vector<16x32xf32>
    %cst = arith.constant 1.000000e+00 : f32
    %3 = vector.broadcast %cst : f32 to vector<16x1xf32>
    %4 = arith.divf %1, %3 : vector<16x1xf32>
    %cst_1 = arith.constant 1.00000012 : f32
    %5 = vector.broadcast %cst_1 : f32 to vector<16x1xf32>
    %6 = arith.maximumf %4, %5 : vector<16x1xf32>
    %7 = arith.mulf %6, %6 : vector<16x1xf32>
    %cst_2 = arith.constant 1.000000e+00 : f32
    %8 = vector.broadcast %cst_2 : f32 to vector<16x1xf32>
    %9 = arith.subf %7, %8 : vector<16x1xf32>
    %10 = math.sqrt %9 : vector<16x1xf32>
    %11 = arith.addf %6, %10 : vector<16x1xf32>
    %12 = math.log %11 : vector<16x1xf32>
    %cst_3 = arith.constant 1.000000e+00 : f32
    %13 = vector.broadcast %cst_3 : f32 to vector<16x1xf32>
    %14 = arith.mulf %13, %12 : vector<16x1xf32>
    %15 = arith.mulf %2, %2 : vector<16x32xf32>
    %cst_4 = arith.constant dense<0.000000e+00> : vector<16xf32>
    %16 = vector.multi_reduction <add>, %15, %cst_4 [1] : vector<16x32xf32> to vector<16xf32>
    %17 = vector.shape_cast %16 : vector<16xf32> to vector<16x1xf32>
    %cst_5 = arith.constant 9.99999997E-7 : f32
    %18 = vector.broadcast %cst_5 : f32 to vector<16x1xf32>
    %19 = arith.addf %17, %18 : vector<16x1xf32>
    %20 = math.sqrt %19 : vector<16x1xf32>
    %21 = arith.divf %14, %20 : vector<16x1xf32>
    %22 = vector.broadcast %21 : vector<16x1xf32> to vector<16x32xf32>
    %23 = arith.mulf %22, %2 : vector<16x32xf32>
    %c0_6 = arith.constant 0 : index
    %c0_7 = arith.constant 0 : index
    %24 = vector.load %arg2[%c0_6, %c0_7] : memref<32x15xf32, #tpu.memory_space<vmem>>, vector<32x15xf32>
    %cst_8 = arith.constant dense<0.000000e+00> : vector<16x15xf32>
    %25 = tpu.matmul %23, %24, %cst_8 {dimension_numbers = #tpu.dot_dimension_numbers<[1], [0], [0], [1], [0, 0, 1, 1], [], []>} : vector<16x32xf32>, vector<32x15xf32>, vector<16x15xf32> -> vector<16x15xf32>
    %c0_9 = arith.constant 0 : index
    %c0_10 = arith.constant 0 : index
    %26 = vector.load %arg3[%c0_9, %c0_10] : memref<1x15xf32, #tpu.memory_space<vmem>>, vector<1x15xf32>
    %27 = vector.broadcast %26 : vector<1x15xf32> to vector<16x15xf32>
    %28 = arith.addf %25, %27 : vector<16x15xf32>
    %29 = arith.mulf %28, %28 : vector<16x15xf32>
    %cst_11 = arith.constant dense<0.000000e+00> : vector<16xf32>
    %30 = vector.multi_reduction <add>, %29, %cst_11 [1] : vector<16x15xf32> to vector<16xf32>
    %31 = vector.shape_cast %30 : vector<16xf32> to vector<16x1xf32>
    %cst_12 = arith.constant 9.99999997E-7 : f32
    %32 = vector.broadcast %cst_12 : f32 to vector<16x1xf32>
    %33 = arith.addf %31, %32 : vector<16x1xf32>
    %34 = math.sqrt %33 : vector<16x1xf32>
    %cst_13 = arith.constant 5.000000e+01 : f32
    %35 = vector.broadcast %cst_13 : f32 to vector<16x1xf32>
    %36 = arith.minimumf %34, %35 : vector<16x1xf32>
    %cst_14 = arith.constant 1.000000e+00 : f32
    %37 = vector.broadcast %cst_14 : f32 to vector<16x1xf32>
    %38 = arith.divf %36, %37 : vector<16x1xf32>
    %39 = math.exp %38 : vector<16x1xf32>
    %cst_15 = arith.constant 0.000000e+00 : f32
    %40 = vector.broadcast %cst_15 : f32 to vector<16x1xf32>
    %41 = arith.subf %40, %38 : vector<16x1xf32>
    %42 = math.exp %41 : vector<16x1xf32>
    %43 = arith.subf %39, %42 : vector<16x1xf32>
    %cst_16 = arith.constant 5.000000e-01 : f32
    %44 = vector.broadcast %cst_16 : f32 to vector<16x1xf32>
    %45 = arith.mulf %44, %43 : vector<16x1xf32>
    %cst_17 = arith.constant 1.000000e+00 : f32
    %46 = vector.broadcast %cst_17 : f32 to vector<16x1xf32>
    %47 = arith.mulf %46, %45 : vector<16x1xf32>
    %48 = vector.broadcast %34 : vector<16x1xf32> to vector<16x15xf32>
    %49 = arith.divf %28, %48 : vector<16x15xf32>
    %50 = vector.broadcast %47 : vector<16x1xf32> to vector<16x15xf32>
    %51 = arith.mulf %50, %49 : vector<16x15xf32>
    %52 = arith.mulf %51, %51 : vector<16x15xf32>
    %cst_18 = arith.constant dense<0.000000e+00> : vector<16xf32>
    %53 = vector.multi_reduction <add>, %52, %cst_18 [1] : vector<16x15xf32> to vector<16xf32>
    %54 = vector.shape_cast %53 : vector<16xf32> to vector<16x1xf32>
    %cst_19 = arith.constant 9.99999997E-7 : f32
    %55 = vector.broadcast %cst_19 : f32 to vector<16x1xf32>
    %56 = arith.addf %54, %55 : vector<16x1xf32>
    %57 = math.sqrt %56 : vector<16x1xf32>
    %cst_20 = arith.constant 1.000000e+03 : f32
    %58 = vector.broadcast %cst_20 : f32 to vector<16x1xf32>
    %59 = arith.divf %58, %57 : vector<16x1xf32>
    %cst_21 = arith.constant 1.000000e+00 : f32
    %60 = vector.broadcast %cst_21 : f32 to vector<16x1xf32>
    %61 = arith.minimumf %60, %59 : vector<16x1xf32>
    %62 = vector.broadcast %61 : vector<16x1xf32> to vector<16x15xf32>
    %63 = arith.mulf %51, %62 : vector<16x15xf32>
    %64 = arith.mulf %63, %63 : vector<16x15xf32>
    %cst_22 = arith.constant dense<0.000000e+00> : vector<16xf32>
    %65 = vector.multi_reduction <add>, %64, %cst_22 [1] : vector<16x15xf32> to vector<16xf32>
    %66 = vector.shape_cast %65 : vector<16xf32> to vector<16x1xf32>
    %cst_23 = arith.constant 1.000000e+00 : f32
    %67 = vector.broadcast %cst_23 : f32 to vector<16x1xf32>
    %68 = arith.addf %67, %66 : vector<16x1xf32>
    %69 = math.sqrt %68 : vector<16x1xf32>
    %70 = tpu.concatenate %69, %63 in 1 : vector<16x1xf32>, vector<16x15xf32> -> vector<16x16xf32>
    %c0_24 = arith.constant 0 : index
    %c0_25 = arith.constant 0 : index
    %71 = vector.load %arg4[%c0_24, %c0_25] : memref<16x16xf32, #tpu.memory_space<vmem>>, vector<16x16xf32>
    tpu.vector_store %arg4[%c0_24, %c0_25], %70 {strides = array<i32>} : memref<16x16xf32, #tpu.memory_space<vmem>>, vector<16x16xf32>,
    return
  }
  func.func @transform_0(%arg0: i32) -> (i32, i32) {
    %c0_i32 = arith.constant 0 : i32
    %c0_i32_0 = arith.constant 0 : i32
    return %arg0, %c0_i32 : i32, i32
  }
  func.func @transform_1(%arg0: i32) -> (i32, i32) {
    %c0_i32 = arith.constant 0 : i32
    %c0_i32_0 = arith.constant 0 : i32
    %c0_i32_1 = arith.constant 0 : i32
    return %c0_i32, %c0_i32_0 : i32, i32
  }
  func.func @transform_2(%arg0: i32) -> (i32, i32) {
    %c0_i32 = arith.constant 0 : i32
    %c0_i32_0 = arith.constant 0 : i32
    %c0_i32_1 = arith.constant 0 : i32
    return %c0_i32, %c0_i32_0 : i32, i32
  }
  func.func @transform_3(%arg0: i32) -> (i32, i32) {
    %c0_i32 = arith.constant 0 : i32
    %c0_i32_0 = arith.constant 0 : i32
    return %arg0, %c0_i32 : i32, i32
  }
}

</mosaic_0001>

<bundles_post_ra>
// kernel: tpu_custom_call.1
= control target key start
LH: loop header
LB: loop body
LE: loop exit
PB: predicated region body
PF: predicated region fallthrough
CT: control target
= control target key end

     0   :  { %s649_s12 = smov 0   ;;  %s716_s0 = inlined_call_operand.vmem [shape: f32[64,33], index: 0, kind: input, shape index: {}]   ;;  %s717_s1 = inlined_call_operand.vmem [shape: f32[32,15], index: 1, kind: input, shape index: {}]   ;;  %s718_s2 = inlined_call_operand.vmem [shape: f32[1,15], index: 2, kind: input, shape index: {}]   ;;  %s719_s3 = inlined_call_operand.vmem [shape: f32[64,16], index: 3, kind: output, shape index: {}]  }
   0x1 LB: > { %s520_s13 = sadd.s32 4294967295, %s624_s12   ;;  %p524_p0 = scmp.ge.s32.totalorder %s624_s12, 1  ;;  %s624_s12 = sphi %s649_s12, %s13_s12  }
   0x2   : > { %p138_p1 = scmp.lt.s32.totalorder %s624_s12, 5 }
   0x4   : > { %p139_p2 = pnand %p524_p0, %p138_p1 }
   0x5   : > { %s525_s14 = sshll.u32 (!%p139_p2), %s520_s13, 1  ;;  %s626_s19 = smov (!%p139_p2), 127   ;;  %vm212_vm0 = vcmask (!%p139_p2), 261120   ;;  %v627_v8 = vmov (!%p139_p2), 0   ;;  %v251_v49 = vld [vmem:[%s717_s1] sm:$0xff] (!%p139_p2)  ;;  %v252_v50 = vld [vmem:[%s717_s1 + $0x8] sm:$0xff] (!%p139_p2) }
   0x6   : > { %142 = sbr.rel (%p139_p2) target bundleno = 1303 (0x517), region = 32  ;;  %p163_p3 = scmp.lt.s32.totalorder (!%p139_p2), %s525_s14, 7  ;;  %572 = vset.pattern.permute.xlu0 (!%p139_p2), %v627_v8  ;;  %573 = vset.pattern.permute.xlu1 (!%p139_p2), %v627_v8  ;;  %v553_v51 = vpack.c.bf16 (!%p139_p2), %v252_v50, %v251_v49  ;;  %v253_v52 = vld [vmem:[%s717_s1 + $0x10] sm:$0xff] (!%p139_p2)  ;;  %v254_v53 = vld [vmem:[%s717_s1 + $0x18] sm:$0xff] (!%p139_p2)  ;;  %v531_v61 = vld [vmem:[%s718_s2] ss:$0 sm:$0xff] (!%p139_p2) }
   0x7   : > { %v557_v54 = vpack.c.bf16 (!%p139_p2), %v254_v53, %v253_v52  ;;  %vm349_vm9 = vcmask (!%p139_p2), 121856   ;;  %s628_s30 = smov (!%p139_p2), 1  }
   0x8   : > { %554 = vmatprep.subr.bf16.mxu0 (!%p139_p2), %v553_v51 }
   0x9   : > { %556 = vmatpush3.bf16.msra.mxu0 (!%p139_p2), %v553_v51 }
   0xa   : > { %558 = vmatprep.subr.bf16.mxu0 (!%p139_p2), %v557_v54 }
   0xd   : > { %s721_s14 = smov (!%p163_p3, %s525_s14), 7  ;;  %560 = vmatpush3.bf16.msra.mxu0 %v557_v54 }
   0xe   : > { %s526_s15 = sshll.u32 %s721_s14, 3 }
   0xf   : > { %s166_s18 = scalar_lea.vmem %s716_s0, %s526_s15  ;;  %s172_s6 = scalar_lea.vmem %s719_s3, %s526_s15 }
  0x10   : > { %v665_v0 = vld [vmem:[%s166_s18] sm:$0xff]  ;;  %v667_v1 = vld [vmem:[%s166_s18 + $0x8] sm:$0xff] }
  0x11   : > { %v202_v2 = vmul.f32 %v665_v0, %v665_v0  ;;  %v203_v3 = vmul.f32 %v667_v1, %v667_v1  ;;  %v176_v9 = vmax.f32 %v665_v0, 1.0000001  ;;  %v177_v10 = vmax.f32 %v667_v1, 1.0000001 }
  0x13   : > { %206 = vrot.lane.b32.xlu0 %v202_v2, %s626_s19  ;;  %v178_v11 = vmul.f32 %v176_v9, %v176_v9  ;;  %v179_v12 = vmul.f32 %v177_v10, %v177_v10 }
  0x15   : > { %v529_v13 = vadd.f32 -1.0, %v178_v11  ;;  %v530_v14 = vadd.f32 -1.0, %v179_v12 }
  0x17   : > { %208 = vrot.lane.b32.xlu0 %v203_v3, %s626_s19  ;;  %574 = vrsqrt.f32 %v529_v13  ;;  %vm184_vm1 = vcmp.eq.f32.partialorder %v529_v13, inf  ;;  %v187_v19 = vand.u32 2147483648, %v529_v13  ;;  %vm186_vm2 = vcmp.eq.f32.partialorder %v529_v13, 0.0 }
  0x18   : > { %576 = vrsqrt.f32 %v530_v14  ;;  %vm191_vm3 = vcmp.eq.f32.partialorder %v530_v14, inf  ;;  %v194_v26 = vand.u32 2147483648, %v530_v14  ;;  %vm193_vm4 = vcmp.eq.f32.partialorder %v530_v14, 0.0 }
  0x21   : > { %v575_v15 = vpop.eup %574 }
  0x22   : > { %v183_v16 = vmul.f32 %v575_v15, %v529_v13  ;;  %v577_v17 = vpop.eup %576 }
  0x23   : > { %v190_v22 = vmul.f32 %v577_v17, %v530_v14 }
  0x24   : > { %v185_v21 = vsel %vm184_vm1, %v529_v13, %v183_v16 }
  0x25   : > { %v188_v24 = vsel %vm186_vm2, %v187_v19, %v185_v21  ;;  %v192_v27 = vsel %vm191_vm3, %v530_v14, %v190_v22  ;;  %vm458_vm3 = vcmask 7168  }
  0x26   : > { %v196_v28 = vadd.f32 %v188_v24, %v176_v9  ;;  %v195_v29 = vsel %vm193_vm4, %v194_v26, %v192_v27 }
  0x27   : > { %v197_v30 = vadd.f32 %v195_v29, %v177_v10 }
  0x85   : > { %v207_v4 = vpop.permute.xlu0 %206 }
  0x86   : > { %v213_v5 = vsel %vm212_vm0, %v207_v4, 0.0 }
  0x87   : > { %214 = vadd.xlane.f32.xlu1 %v213_v5 }
  0x89   : > { %v209_v6 = vpop.permute.xlu0 %208 }
  0x8a   : > { %v216_v7 = vsel %vm212_vm0, %v209_v6, 0.0 }
  0x8b   : > { %217 = vadd.xlane.f32.xlu1 %v216_v7 }
 0x114   : > { %v215_v18 = vpop.xlane.xlu1 %214 }
 0x115   : > { %v219_v20 = vadd.f32 1e-06, %v215_v18 }
 0x117   : > { %578 = vrsqrt.f32 %v219_v20  ;;  %vm223_vm5 = vcmp.eq.f32.partialorder %v219_v20, inf  ;;  %v226_v33 = vand.u32 2147483648, %v219_v20  ;;  %vm225_vm6 = vcmp.eq.f32.partialorder %v219_v20, 0.0 }
 0x118   : > { %v218_v23 = vpop.xlane.xlu1 %217 }
 0x119   : > { %v220_v25 = vadd.f32 1e-06, %v218_v23 }
 0x11b   : > { %580 = vrsqrt.f32 %v220_v25  ;;  %vm230_vm7 = vcmp.eq.f32.partialorder %v220_v25, inf  ;;  %v233_v38 = vand.u32 2147483648, %v220_v25  ;;  %vm232_vm8 = vcmp.eq.f32.partialorder %v220_v25, 0.0 }
 0x11c   : > { %582 = vlog2.f32 %v196_v28 }
 0x11d   : > { %584 = vlog2.f32 %v197_v30 }
 0x121   : > { %v579_v31 = vpop.eup %578 }
 0x122   : > { %v222_v32 = vmul.f32 %v579_v31, %v219_v20 }
 0x124   : > { %v224_v34 = vsel %vm223_vm5, %v219_v20, %v222_v32  ;;  %vm461_vm5 = vcmask 130048  }
 0x125   : > { %v581_v35 = vpop.eup %580  ;;  %v227_v36 = vsel %vm225_vm6, %v226_v33, %v224_v34 }
 0x126   : > { %v229_v37 = vmul.f32 %v581_v35, %v220_v25  ;;  %586 = vrcp.f32 %v227_v36  ;;  %v583_v41 = vpop.eup %582 }
 0x127   : > { %v199_v42 = vmul.f32 0.6931472, %v583_v41  ;;  %v585_v43 = vpop.eup %584 }
 0x128   : > { %v231_v39 = vsel %vm230_vm7, %v220_v25, %v229_v37  ;;  %v201_v46 = vmul.f32 0.6931472, %v585_v43 }
 0x129   : > { %v234_v40 = vsel %vm232_vm8, %v233_v38, %v231_v39 }
 0x12a   : > { %588 = vrcp.f32 %v234_v40 }
 0x130   : > { %v587_v44 = vpop.eup %586 }
 0x131   : > { %v236_v45 = vmul.f32 %v587_v44, %v199_v42 }
 0x133   : > { %241 = vperm.xlu0 %572, %v236_v45  }
 0x134   : > { %v589_v47 = vpop.eup %588 }
 0x135   : > { %v238_v48 = vmul.f32 %v589_v47, %v201_v46 }
 0x137   : > { %246 = vperm.xlu1 %573, %v238_v48  }
 0x1b2   : > { %v242_v55 = vpop.permute.xlu0 %241 }
 0x1b3   : > { %v249_v56 = vmul.f32 %v242_v55, %v665_v0 }
 0x1b5   : > { %264 = vrot.lane.b32.xlu0 %v249_v56, %s626_s19 }
 0x1b6   : > { %v247_v57 = vpop.permute.xlu1 %246 }
 0x1b7   : > { %v250_v58 = vmul.f32 %v247_v57, %v667_v1 }
 0x1b9   : > { %266 = vrot.lane.b32.xlu0 %v250_v58, %s626_s19 }
 0x227   : > { %v265_v59 = vpop.permute.xlu0 %264 }
 0x228   : > { %550 = vmatprep.mubr.msk.f32.mxu0 %vm212_vm0, %v265_v59 }
 0x22b   : > { %v267_v60 = vpop.permute.xlu0 %266 }
 0x22c   : > { %551 = vmatmul.mubr.msk.f32.vlgmr.msra.gmra.mrb[0].mxu0 %vm212_vm0, %v267_v60 }
 0x2ff   : > { %v552_v62 = vpop.f32.mrb[0].mxu0 }
 0x300   : > { %v344_v63 = vadd.f32 %v552_v62, %v531_v61  ;;  %v338_v0 = vpop.f32.mrb[1].mxu0 }
 0x301   : > { %v339_v2 = vadd.f32 %v531_v61, %v338_v0 }
 0x302   : > { %v348_v3 = vmul.f32 %v344_v63, %v344_v63 }
 0x303   : > { %v347_v4 = vmul.f32 %v339_v2, %v339_v2 }
 0x304   : > { %v353_v1 = vsel %vm349_vm9, %v348_v3, 0.0 }
 0x305   : > { %354 = vadd.xlane.f32.xlu1 %v353_v1  ;;  %v350_v5 = vsel %vm349_vm9, %v347_v4, 0.0 }
 0x306   : > { %351 = vadd.xlane.f32.xlu0 %v350_v5 }
 0x392   : > { %v355_v6 = vpop.xlane.xlu1 %354 }
 0x393   : > { %v357_v7 = vadd.f32 1e-06, %v355_v6  ;;  %v352_v8 = vpop.xlane.xlu0 %351 }
 0x394   : > { %v356_v9 = vadd.f32 1e-06, %v352_v8 }
 0x395   : > { %590 = vrsqrt.f32 %v357_v7  ;;  %vm367_vm10 = vcmp.eq.f32.partialorder %v357_v7, inf  ;;  %v370_v13 = vand.u32 2147483648, %v357_v7  ;;  %vm369_vm11 = vcmp.eq.f32.partialorder %v357_v7, 0.0 }
 0x396   : > { %592 = vrsqrt.f32 %v356_v9  ;;  %vm360_vm12 = vcmp.eq.f32.partialorder %v356_v9, inf  ;;  %v363_v16 = vand.u32 2147483648, %v356_v9  ;;  %vm362_vm13 = vcmp.eq.f32.partialorder %v356_v9, 0.0 }
 0x39f   : > { %v591_v10 = vpop.eup %590 }
 0x3a0   : > { %v593_v11 = vpop.eup %592  ;;  %v366_v12 = vmul.f32 %v591_v10, %v357_v7 }
 0x3a1   : > { %v359_v14 = vmul.f32 %v593_v11, %v356_v9 }
 0x3a2   : > { %v368_v15 = vsel %vm367_vm10, %v357_v7, %v366_v12 }
 0x3a3   : > { %v361_v17 = vsel %vm360_vm12, %v356_v9, %v359_v14  ;;  %v371_v18 = vsel %vm369_vm11, %v370_v13, %v368_v15 }
 0x3a4   : > { %v364_v19 = vsel %vm362_vm13, %v363_v16, %v361_v17  ;;  %v373_v20 = vmin.f32 %v371_v18, 50.0  ;;  %594 = vrcp.f32 %v371_v18 }
 0x3a5   : > { %v372_v21 = vmin.f32 %v364_v19, 50.0  ;;  %596 = vrcp.f32 %v364_v19 }
 0x3a6   : > { %v376_v22 = vmul.f32 1.442695, %v373_v20  ;;  %v379_v23 = vsub.f32 0.0, %v373_v20 }
 0x3a7   : > { %v374_v24 = vmul.f32 1.442695, %v372_v21  ;;  %v378_v25 = vsub.f32 0.0, %v372_v21 }
 0x3a8   : > { %598 = vpow2.f32 %v376_v22  ;;  %v382_v26 = vmul.f32 1.442695, %v379_v23 }
 0x3a9   : > { %600 = vpow2.f32 %v374_v24  ;;  %v380_v27 = vmul.f32 1.442695, %v378_v25 }
 0x3aa   : > { %602 = vpow2.f32 %v382_v26 }
 0x3ab   : > { %604 = vpow2.f32 %v380_v27 }
 0x3ae   : > { %v595_v28 = vpop.eup %594 }
 0x3af   : > { %v597_v29 = vpop.eup %596  ;;  %v391_v39 = vmul.f32 %v595_v28, %v344_v63 }
 0x3b0   : > { %v389_v38 = vmul.f32 %v597_v29, %v339_v2 }
 0x3b2   : > { %v599_v30 = vpop.eup %598 }
 0x3b3   : > { %v601_v31 = vpop.eup %600 }
 0x3b4   : > { %v603_v32 = vpop.eup %602 }
 0x3b5   : > { %v605_v33 = vpop.eup %604  ;;  %v385_v34 = vsub.f32 %v599_v30, %v603_v32 }
 0x3b6   : > { %v384_v35 = vsub.f32 %v601_v31, %v605_v33 }
 0x3b7   : > { %v387_v36 = vmul.f32 0.5, %v385_v34 }
 0x3b8   : > { %v386_v37 = vmul.f32 0.5, %v384_v35 }
 0x3b9   : > { %v393_v41 = vmul.f32 %v391_v39, %v387_v36 }
 0x3ba   : > { %v392_v40 = vmul.f32 %v389_v38, %v386_v37 }
 0x3bb   : > { %v395_v44 = vmul.f32 %v393_v41, %v393_v41 }
 0x3bc   : > { %v394_v42 = vmul.f32 %v392_v40, %v392_v40 }
 0x3bd   : > { %v399_v45 = vsel %vm349_vm9, %v395_v44, 0.0 }
 0x3be   : > { %v396_v43 = vsel %vm349_vm9, %v394_v42, 0.0 }
 0x3bf   : > { %397 = vadd.xlane.f32.xlu0 %v396_v43 }
 0x3c3   : > { %400 = vadd.xlane.f32.xlu0 %v399_v45 }
 0x44c   : > { %v398_v46 = vpop.xlane.xlu0 %397 }
 0x44d   : > { %v402_v47 = vadd.f32 1e-06, %v398_v46 }
 0x44f   : > { %606 = vrsqrt.f32 %v402_v47  ;;  %vm406_vm14 = vcmp.eq.f32.partialorder %v402_v47, inf  ;;  %v409_v52 = vand.u32 2147483648, %v402_v47  ;;  %vm408_vm15 = vcmp.eq.f32.partialorder %v402_v47, 0.0 }
 0x450   : > { %v401_v48 = vpop.xlane.xlu0 %400 }
 0x451   : > { %v403_v49 = vadd.f32 1e-06, %v401_v48 }
 0x453   : > { %608 = vrsqrt.f32 %v403_v49  ;;  %vm413_vm0 = vcmp.eq.f32.partialorder %v403_v49, inf  ;;  %v416_v57 = vand.u32 2147483648, %v403_v49  ;;  %vm415_vm1 = vcmp.eq.f32.partialorder %v403_v49, 0.0 }
 0x459   : > { %v607_v50 = vpop.eup %606 }
 0x45a   : > { %v405_v51 = vmul.f32 %v607_v50, %v402_v47 }
 0x45c   : > { %v407_v53 = vsel %vm406_vm14, %v402_v47, %v405_v51 }
 0x45d   : > { %v609_v54 = vpop.eup %608  ;;  %v410_v55 = vsel %vm408_vm15, %v409_v52, %v407_v53 }
 0x45e   : > { %610 = vrcp.f32 %v410_v55  ;;  %v412_v56 = vmul.f32 %v609_v54, %v403_v49 }
 0x460   : > { %v414_v58 = vsel %vm413_vm0, %v403_v49, %v412_v56 }
 0x461   : > { %v417_v59 = vsel %vm415_vm1, %v416_v57, %v414_v58 }
 0x462   : > { %612 = vrcp.f32 %v417_v59 }
 0x468   : > { %v611_v60 = vpop.eup %610 }
 0x469   : > { %v419_v61 = vmul.f32 1000.0, %v611_v60 }
 0x46b   : > { %v422_v62 = vmin.f32 %v419_v61, 1.0 }
 0x46c   : > { %v613_v63 = vpop.eup %612 }
 0x46d   : > { %v424_v0 = vmul.f32 %v422_v62, %v392_v40  ;;  %v421_v2 = vmul.f32 1000.0, %v613_v63 }
 0x46f   : > { %v426_v3 = vmul.f32 %v424_v0, %v424_v0  ;;  %v423_v4 = vmin.f32 %v421_v2, 1.0 }
 0x471   : > { %v428_v1 = vsel %vm349_vm9, %v426_v3, 0.0  ;;  %v425_v5 = vmul.f32 %v423_v4, %v393_v41 }
 0x472   : > { %429 = vadd.xlane.f32.xlu1 %v428_v1 }
 0x473   : > { %v427_v6 = vmul.f32 %v425_v5, %v425_v5 }
 0x475   : > { %v431_v7 = vsel %vm349_vm9, %v427_v6, 0.0 }
 0x476   : > { %432 = vadd.xlane.f32.xlu0 %v431_v7 }
 0x483   : > { %452 = vrot.lane.b32.xlu1 %v424_v0, %s628_s30 }
 0x48c   : > { %454 = vrot.lane.b32.xlu0 %v425_v5, %s628_s30 }
 0x4ff   : > { %v430_v8 = vpop.xlane.xlu1 %429 }
 0x500   : > { %v434_v9 = vadd.f32 1.0, %v430_v8 }
 0x502   : > { %614 = vrsqrt.f32 %v434_v9  ;;  %vm438_vm2 = vcmp.eq.f32.partialorder %v434_v9, inf  ;;  %v441_v14 = vand.u32 2147483648, %v434_v9  ;;  %vm440_vm4 = vcmp.eq.f32.partialorder %v434_v9, 0.0 }
 0x503   : > { %v433_v10 = vpop.xlane.xlu0 %432  ;;  %v453_v18 = vpop.permute.xlu1 %452 }
 0x504   : > { %v435_v11 = vadd.f32 1.0, %v433_v10 }
 0x506   : > { %616 = vrsqrt.f32 %v435_v11  ;;  %vm445_vm6 = vcmp.eq.f32.partialorder %v435_v11, inf  ;;  %v448_v21 = vand.u32 2147483648, %v435_v11  ;;  %vm447_vm7 = vcmp.eq.f32.partialorder %v435_v11, 0.0 }
 0x507   : > { %v455_v24 = vpop.permute.xlu0 %454 }
 0x50c   : > { %v615_v12 = vpop.eup %614 }
 0x50d   : > { %v437_v13 = vmul.f32 %v615_v12, %v434_v9 }
 0x50f   : > { %v439_v15 = vsel %vm438_vm2, %v434_v9, %v437_v13 }
 0x510   : > { %v617_v16 = vpop.eup %616  ;;  %v442_v17 = vsel %vm440_vm4, %v441_v14, %v439_v15 }
 0x511   : > { %v459_v19 = vsel %vm458_vm3, %v442_v17, %v453_v18  ;;  %v444_v20 = vmul.f32 %v617_v16, %v435_v11 }
 0x512   : > { %462 = vst.msk [vmem:[%s172_s6] sm:$0xff] %vm461_vm5, %v459_v19 }
 0x513   : > { %v446_v22 = vsel %vm445_vm6, %v435_v11, %v444_v20 }
 0x514   : > { %v449_v23 = vsel %vm447_vm7, %v448_v21, %v446_v22 }
 0x515   : > { %v460_v25 = vsel %vm458_vm3, %v449_v23, %v455_v24 }
 0x516   : > { %463 = vst.msk [vmem:[%s172_s6 + $0x8] sm:$0xff] %vm461_vm5, %v460_v25 }
 0x517 PF: > { %s13_s12 = sadd.s32 1, %s624_s12  }
 0x518   : > { %p10_p4 = scmp.ge.s32.totalorder %s13_s12, 6  }
 0x51a   :  { %12 = sbr.rel (!%p10_p4) target bundleno = 1 (0x1), region = 62 }

</bundles_post_ra>
